<compile_context>
chip_gen: v5e
topology: v5e:2x2
jax: 0.10.0
libtpu: 0.0.40
codegen_flags: <defaults>
</compile_context>

<pallas_src>
import functools

import jax
import jax.numpy as jnp
from jax.experimental import pallas as pl
from jax.experimental.pallas import tpu as pltpu


def _concat_conv2d_kernel(t_ref, ba_ref, w_ref, x_ref, o_ref, *,
                          nb, cin, cout, kh, kw, img_w, hw, bf16_operands):
    """One batch tile of Nb images per grid step.

    t_ref  : SMEM (1,)                   scalar time
    ba_ref : VMEM (Cout, 2)              column 0 = conv bias, column 1 = hyper weight
    w_ref  : VMEM (KH*KW, Cout, Cin)     per-tap weight matrices, tap = i*KW + j
    x_ref  : VMEM (Nb*Cin, H*W)          lane-dense channel-major batch tile
    o_ref  : VMEM (Nb, Cout, H*W)        lane-dense output (full padded spatial extent)
    """
    # bias = b + a * t, computed ONCE per invocation (hoisted out of all loops).
    t = t_ref[0]
    bias = ba_ref[:, 0:1] + ba_ref[:, 1:2] * t                 # (Cout, 1)

    x = x_ref[...]                                             # (Nb*Cin, H*W) f32

    accs = [None] * nb
    for tap in range(kh * kw):
        i, j = tap // kw, tap % kw
        s = i * img_w + j
        # Tap slab: xs[row, p] = x[row, (p + s) mod H*W].  XLU lane rotation — no
        # VMEM copies.  Wrapped lanes only hit output positions the wrapper crops.
        xs = x if s == 0 else pltpu.roll(x, shift=hw - s, axis=1)
        if bf16_operands:
            xs = xs.astype(jnp.bfloat16)                       # v6e/v7x MXU micro-opt
        w_tap = w_ref[tap]                                     # (Cout, Cin)
        for n in range(nb):
            d = jnp.dot(w_tap, xs[n * cin:(n + 1) * cin, :],
                        preferred_element_type=jnp.float32)    # (Cout, H*W) f32 acc
            accs[n] = d if accs[n] is None else accs[n] + d

    for n in range(nb):
        o_ref[n] = (accs[n] + bias).astype(o_ref.dtype)        # dense 256-lane stores


def concat_conv2d_v2(t, x_nchw, w_oihw, bias, hyper_w, *,
                     batch_block=8, use_bf16_operands=False):
    """t: scalar, x: (N, Cin, H, W), w: (Cout, Cin, KH, KW), bias: (Cout,),
    hyper_w: (Cout, 1).  Returns (N, Cout, OH, OW)  (VALID convolution)."""
    n, cin, h, w = x_nchw.shape
    cout, cin_w, kh, kw = w_oihw.shape
    assert cin_w == cin, "groups != 1 is not supported"
    # TODO(synk): stride!=1, padding!=0, dilation!=1 and transpose=True are not implemented.
    oh, ow = h - kh + 1, w - kw + 1
    hw = h * w

    # Per-tap weight matrices (KH*KW, Cout, Cin); tap index = i*KW + j (matches kernel).
    w_taps = jnp.transpose(w_oihw, (2, 3, 0, 1)).reshape(kh * kw, cout, cin)
    w_taps = w_taps.astype(jnp.bfloat16 if use_bf16_operands else jnp.float32)

    # conv bias + hyper-bias weight packed into a single operand (one less DMA).
    ba = jnp.stack([bias.reshape(-1), hyper_w.reshape(-1)], axis=1).astype(jnp.float32)

    t_arr = jnp.asarray(t, jnp.float32).reshape(1,)

    # Lane-dense input slab — contiguous reshape only, no HBM transpose.
    x2d = x_nchw.reshape(n * cin, hw)

    # Batch tile: Nb images per grid step.  (Nb*Cin, H*W) must satisfy the (8,128)
    # sublane rule unless it is the full array extent.  Per-image VMEM is tiny
    # (~x 4 KB + out 8 KB at these shapes), well under v7x's 32 MiB scoped default;
    # raise vmem_limit_bytes only if batch_block / H*W are scaled up a lot.
    nb = max(1, min(n, batch_block))
    if (nb * cin) % 8 != 0 and nb != n:
        nb = n                                  # single full-extent block is always legal
    n_pad = -(-n // nb) * nb
    if n_pad != n:
        x2d = jnp.pad(x2d, ((0, (n_pad - n) * cin), (0, 0)))

    kernel = functools.partial(
        _concat_conv2d_kernel, nb=nb, cin=cin, cout=cout, kh=kh, kw=kw,
        img_w=w, hw=hw, bf16_operands=use_bf16_operands)

    out = pl.pallas_call(
        kernel,
        out_shape=jax.ShapeDtypeStruct((n_pad, cout, hw), x_nchw.dtype),
        grid=(n_pad // nb,),
        in_specs=[
            pl.BlockSpec(memory_space=pltpu.MemorySpace.SMEM),          # t (scalar)
            pl.BlockSpec((cout, 2), lambda i: (0, 0)),                  # [bias, hyper_w]
            pl.BlockSpec((kh * kw, cout, cin), lambda i: (0, 0, 0)),    # per-tap weights
            pl.BlockSpec((nb * cin, hw), lambda i: (i, 0)),             # x batch tile
        ],
        out_specs=pl.BlockSpec((nb, cout, hw), lambda i: (i, 0, 0)),
        compiler_params=pltpu.CompilerParams(
            dimension_semantics=("parallel",)),     # v7x: both TCs take batch tiles
    )(t_arr, ba, w_taps, x2d)

    # Channel-major padded output -> NCHW is a free contiguous reshape; the crop
    # discards the roll-wrapped / out-of-window spatial positions.
    return out[:n].reshape(n, cout, h, w)[:, :, :oh, :ow]


if __name__ == "__main__":
    # Small, PyTorch-consistent shapes:  x (N=2, Cin=4, H=16, W=16), dim_out=8, ksize=3
    N, CIN, H, W = 2, 4, 16, 16
    COUT, KS = 8, 3

    key = jax.random.PRNGKey(0)
    kx, kwt, kb, ka = jax.random.split(key, 4)

    x = jax.random.normal(kx, (N, CIN, H, W), dtype=jnp.float32)
    conv_w = 0.1 * jax.random.normal(kwt, (COUT, CIN, KS, KS), dtype=jnp.float32)  # OIHW
    conv_b = 0.1 * jax.random.normal(kb, (COUT,), dtype=jnp.float32)
    hyper_w = 0.1 * jax.random.normal(ka, (COUT, 1), dtype=jnp.float32)            # Linear(1, Cout)
    t = jnp.float32(0.5)

    out = concat_conv2d_v2(t, x, conv_w, conv_b, hyper_w)
    out = jax.block_until_ready(out)

    # Pure-JAX reference (nn.Conv2d defaults + hyper-bias broadcast).
    ref_conv = jax.lax.conv_general_dilated(
        x, conv_w, window_strides=(1, 1), padding="VALID",
        dimension_numbers=("NCHW", "OIHW", "NCHW"))
    ref = ref_conv + conv_b.reshape(1, -1, 1, 1) + (hyper_w.reshape(1, -1, 1, 1) * t)

    assert out.shape == (N, COUT, H - KS + 1, W - KS + 1), out.shape
    assert jnp.allclose(out, ref, atol=1e-4, rtol=1e-4), float(jnp.max(jnp.abs(out - ref)))

    # Also exercise the reduced-precision MXU-operand path recommended for v6e/v7x
    # (bf16 operands, f32 accumulation) with a correspondingly loose tolerance.
    out_bf16 = concat_conv2d_v2(t, x, conv_w, conv_b, hyper_w, use_bf16_operands=True)
    out_bf16 = jax.block_until_ready(out_bf16)
    assert jnp.allclose(out_bf16, ref, atol=5e-2, rtol=5e-2), \
        float(jnp.max(jnp.abs(out_bf16 - ref)))

    print("KERNEL_OK")
</pallas_src>

<mosaic_0001>
module attributes {stable_mosaic.version = 11 : i64} {
  func.func @_concat_conv2d_kernel(%arg0: i32, %arg1: memref<1xf32, #tpu.memory_space<smem>>, %arg2: memref<8x2xf32, #tpu.memory_space<vmem>>, %arg3: memref<9x8x4xf32, #tpu.memory_space<vmem>>, %arg4: memref<8x256xf32, #tpu.memory_space<vmem>>, %arg5: memref<2x8x256xf32, #tpu.memory_space<vmem>>) attributes {dimension_semantics = [#tpu.dimension_semantics<parallel>], iteration_bounds = array<i64: 1>, scalar_prefetch = 0 : i64, scratch_operands = 0 : i64, tpu.core_type = #tpu.core_type<tc>, window_params = [{transform_indices = @transform_0, window_bounds = array<i64: 1>}, {pipeline_mode = #tpu.pipeline_mode<synchronous>, transform_indices = @transform_1, window_bounds = array<i64: 8, 2>}, {pipeline_mode = #tpu.pipeline_mode<synchronous>, transform_indices = @transform_2, window_bounds = array<i64: 9, 8, 4>}, {transform_indices = @transform_3, window_bounds = array<i64: 8, 256>}, {transform_indices = @transform_4, window_bounds = array<i64: 2, 8, 256>}]} {
    %c0 = arith.constant 0 : index
    %0 = memref.load %arg1[%c0] : memref<1xf32, #tpu.memory_space<smem>>
    %c0_0 = arith.constant 0 : index
    %c0_1 = arith.constant 0 : index
    %1 = vector.load %arg2[%c0_0, %c0_1] : memref<8x2xf32, #tpu.memory_space<vmem>>, vector<8x1xf32>
    %c0_2 = arith.constant 0 : index
    %c1 = arith.constant 1 : index
    %2 = vector.load %arg2[%c0_2, %c1] : memref<8x2xf32, #tpu.memory_space<vmem>>, vector<8x1xf32>
    %3 = vector.broadcast %0 : f32 to vector<8x1xf32>
    %4 = arith.mulf %2, %3 : vector<8x1xf32>
    %5 = arith.addf %1, %4 : vector<8x1xf32>
    %c0_3 = arith.constant 0 : index
    %c0_4 = arith.constant 0 : index
    %6 = vector.load %arg4[%c0_3, %c0_4] : memref<8x256xf32, #tpu.memory_space<vmem>>, vector<8x256xf32>
    %c0_5 = arith.constant 0 : index
    %c0_6 = arith.constant 0 : index
    %c0_7 = arith.constant 0 : index
    %7 = vector.load %arg3[%c0_5, %c0_6, %c0_7] : memref<9x8x4xf32, #tpu.memory_space<vmem>>, vector<1x8x4xf32>
    %8 = vector.shape_cast %7 : vector<1x8x4xf32> to vector<8x4xf32>
    %9 = vector.extract_strided_slice %6 {offsets = [0, 0], sizes = [4, 256], strides = [1, 1]} : vector<8x256xf32> to vector<4x256xf32>
    %cst = arith.constant dense<0.000000e+00> : vector<8x256xf32>
    %10 = tpu.matmul %8, %9, %cst {dimension_numbers = #tpu.dot_dimension_numbers<[1], [0], [0], [1], [0, 0, 1, 1], [], []>} : vector<8x4xf32>, vector<4x256xf32>, vector<8x256xf32> -> vector<8x256xf32>
    %11 = vector.extract_strided_slice %6 {offsets = [4, 0], sizes = [4, 256], strides = [1, 1]} : vector<8x256xf32> to vector<4x256xf32>
    %cst_8 = arith.constant dense<0.000000e+00> : vector<8x256xf32>
    %12 = tpu.matmul %8, %11, %cst_8 {dimension_numbers = #tpu.dot_dimension_numbers<[1], [0], [0], [1], [0, 0, 1, 1], [], []>} : vector<8x4xf32>, vector<4x256xf32>, vector<8x256xf32> -> vector<8x256xf32>
    %c255_i32 = arith.constant 255 : i32
    %13 = tpu.dynamic_rotate %6 by %c255_i32 dim 1 : vector<8x256xf32>, i32 -> vector<8x256xf32>
    %c1_9 = arith.constant 1 : index
    %c0_10 = arith.constant 0 : index
    %c0_11 = arith.constant 0 : index
    %14 = vector.load %arg3[%c1_9, %c0_10, %c0_11] : memref<9x8x4xf32, #tpu.memory_space<vmem>>, vector<1x8x4xf32>
    %15 = vector.shape_cast %14 : vector<1x8x4xf32> to vector<8x4xf32>
    %16 = vector.extract_strided_slice %13 {offsets = [0, 0], sizes = [4, 256], strides = [1, 1]} : vector<8x256xf32> to vector<4x256xf32>
    %cst_12 = arith.constant dense<0.000000e+00> : vector<8x256xf32>
    %17 = tpu.matmul %15, %16, %cst_12 {dimension_numbers = #tpu.dot_dimension_numbers<[1], [0], [0], [1], [0, 0, 1, 1], [], []>} : vector<8x4xf32>, vector<4x256xf32>, vector<8x256xf32> -> vector<8x256xf32>
    %18 = arith.addf %10, %17 : vector<8x256xf32>
    %19 = vector.extract_strided_slice %13 {offsets = [4, 0], sizes = [4, 256], strides = [1, 1]} : vector<8x256xf32> to vector<4x256xf32>
    %cst_13 = arith.constant dense<0.000000e+00> : vector<8x256xf32>
    %20 = tpu.matmul %15, %19, %cst_13 {dimension_numbers = #tpu.dot_dimension_numbers<[1], [0], [0], [1], [0, 0, 1, 1], [], []>} : vector<8x4xf32>, vector<4x256xf32>, vector<8x256xf32> -> vector<8x256xf32>
    %21 = arith.addf %12, %20 : vector<8x256xf32>
    %c254_i32 = arith.constant 254 : i32
    %22 = tpu.dynamic_rotate %6 by %c254_i32 dim 1 : vector<8x256xf32>, i32 -> vector<8x256xf32>
    %c2 = arith.constant 2 : index
    %c0_14 = arith.constant 0 : index
    %c0_15 = arith.constant 0 : index
    %23 = vector.load %arg3[%c2, %c0_14, %c0_15] : memref<9x8x4xf32, #tpu.memory_space<vmem>>, vector<1x8x4xf32>
    %24 = vector.shape_cast %23 : vector<1x8x4xf32> to vector<8x4xf32>
    %25 = vector.extract_strided_slice %22 {offsets = [0, 0], sizes = [4, 256], strides = [1, 1]} : vector<8x256xf32> to vector<4x256xf32>
    %cst_16 = arith.constant dense<0.000000e+00> : vector<8x256xf32>
    %26 = tpu.matmul %24, %25, %cst_16 {dimension_numbers = #tpu.dot_dimension_numbers<[1], [0], [0], [1], [0, 0, 1, 1], [], []>} : vector<8x4xf32>, vector<4x256xf32>, vector<8x256xf32> -> vector<8x256xf32>
    %27 = arith.addf %18, %26 : vector<8x256xf32>
    %28 = vector.extract_strided_slice %22 {offsets = [4, 0], sizes = [4, 256], strides = [1, 1]} : vector<8x256xf32> to vector<4x256xf32>
    %cst_17 = arith.constant dense<0.000000e+00> : vector<8x256xf32>
    %29 = tpu.matmul %24, %28, %cst_17 {dimension_numbers = #tpu.dot_dimension_numbers<[1], [0], [0], [1], [0, 0, 1, 1], [], []>} : vector<8x4xf32>, vector<4x256xf32>, vector<8x256xf32> -> vector<8x256xf32>
    %30 = arith.addf %21, %29 : vector<8x256xf32>
    %c240_i32 = arith.constant 240 : i32
    %31 = tpu.dynamic_rotate %6 by %c240_i32 dim 1 : vector<8x256xf32>, i32 -> vector<8x256xf32>
    %c3 = arith.constant 3 : index
    %c0_18 = arith.constant 0 : index
    %c0_19 = arith.constant 0 : index
    %32 = vector.load %arg3[%c3, %c0_18, %c0_19] : memref<9x8x4xf32, #tpu.memory_space<vmem>>, vector<1x8x4xf32>
    %33 = vector.shape_cast %32 : vector<1x8x4xf32> to vector<8x4xf32>
    %34 = vector.extract_strided_slice %31 {offsets = [0, 0], sizes = [4, 256], strides = [1, 1]} : vector<8x256xf32> to vector<4x256xf32>
    %cst_20 = arith.constant dense<0.000000e+00> : vector<8x256xf32>
    %35 = tpu.matmul %33, %34, %cst_20 {dimension_numbers = #tpu.dot_dimension_numbers<[1], [0], [0], [1], [0, 0, 1, 1], [], []>} : vector<8x4xf32>, vector<4x256xf32>, vector<8x256xf32> -> vector<8x256xf32>
    %36 = arith.addf %27, %35 : vector<8x256xf32>
    %37 = vector.extract_strided_slice %31 {offsets = [4, 0], sizes = [4, 256], strides = [1, 1]} : vector<8x256xf32> to vector<4x256xf32>
    %cst_21 = arith.constant dense<0.000000e+00> : vector<8x256xf32>
    %38 = tpu.matmul %33, %37, %cst_21 {dimension_numbers = #tpu.dot_dimension_numbers<[1], [0], [0], [1], [0, 0, 1, 1], [], []>} : vector<8x4xf32>, vector<4x256xf32>, vector<8x256xf32> -> vector<8x256xf32>
    %39 = arith.addf %30, %38 : vector<8x256xf32>
    %c239_i32 = arith.constant 239 : i32
    %40 = tpu.dynamic_rotate %6 by %c239_i32 dim 1 : vector<8x256xf32>, i32 -> vector<8x256xf32>
    %c4 = arith.constant 4 : index
    %c0_22 = arith.constant 0 : index
    %c0_23 = arith.constant 0 : index
    %41 = vector.load %arg3[%c4, %c0_22, %c0_23] : memref<9x8x4xf32, #tpu.memory_space<vmem>>, vector<1x8x4xf32>
    %42 = vector.shape_cast %41 : vector<1x8x4xf32> to vector<8x4xf32>
    %43 = vector.extract_strided_slice %40 {offsets = [0, 0], sizes = [4, 256], strides = [1, 1]} : vector<8x256xf32> to vector<4x256xf32>
    %cst_24 = arith.constant dense<0.000000e+00> : vector<8x256xf32>
    %44 = tpu.matmul %42, %43, %cst_24 {dimension_numbers = #tpu.dot_dimension_numbers<[1], [0], [0], [1], [0, 0, 1, 1], [], []>} : vector<8x4xf32>, vector<4x256xf32>, vector<8x256xf32> -> vector<8x256xf32>
    %45 = arith.addf %36, %44 : vector<8x256xf32>
    %46 = vector.extract_strided_slice %40 {offsets = [4, 0], sizes = [4, 256], strides = [1, 1]} : vector<8x256xf32> to vector<4x256xf32>
    %cst_25 = arith.constant dense<0.000000e+00> : vector<8x256xf32>
    %47 = tpu.matmul %42, %46, %cst_25 {dimension_numbers = #tpu.dot_dimension_numbers<[1], [0], [0], [1], [0, 0, 1, 1], [], []>} : vector<8x4xf32>, vector<4x256xf32>, vector<8x256xf32> -> vector<8x256xf32>
    %48 = arith.addf %39, %47 : vector<8x256xf32>
    %c238_i32 = arith.constant 238 : i32
    %49 = tpu.dynamic_rotate %6 by %c238_i32 dim 1 : vector<8x256xf32>, i32 -> vector<8x256xf32>
    %c5 = arith.constant 5 : index
    %c0_26 = arith.constant 0 : index
    %c0_27 = arith.constant 0 : index
    %50 = vector.load %arg3[%c5, %c0_26, %c0_27] : memref<9x8x4xf32, #tpu.memory_space<vmem>>, vector<1x8x4xf32>
    %51 = vector.shape_cast %50 : vector<1x8x4xf32> to vector<8x4xf32>
    %52 = vector.extract_strided_slice %49 {offsets = [0, 0], sizes = [4, 256], strides = [1, 1]} : vector<8x256xf32> to vector<4x256xf32>
    %cst_28 = arith.constant dense<0.000000e+00> : vector<8x256xf32>
    %53 = tpu.matmul %51, %52, %cst_28 {dimension_numbers = #tpu.dot_dimension_numbers<[1], [0], [0], [1], [0, 0, 1, 1], [], []>} : vector<8x4xf32>, vector<4x256xf32>, vector<8x256xf32> -> vector<8x256xf32>
    %54 = arith.addf %45, %53 : vector<8x256xf32>
    %55 = vector.extract_strided_slice %49 {offsets = [4, 0], sizes = [4, 256], strides = [1, 1]} : vector<8x256xf32> to vector<4x256xf32>
    %cst_29 = arith.constant dense<0.000000e+00> : vector<8x256xf32>
    %56 = tpu.matmul %51, %55, %cst_29 {dimension_numbers = #tpu.dot_dimension_numbers<[1], [0], [0], [1], [0, 0, 1, 1], [], []>} : vector<8x4xf32>, vector<4x256xf32>, vector<8x256xf32> -> vector<8x256xf32>
    %57 = arith.addf %48, %56 : vector<8x256xf32>
    %c224_i32 = arith.constant 224 : i32
    %58 = tpu.dynamic_rotate %6 by %c224_i32 dim 1 : vector<8x256xf32>, i32 -> vector<8x256xf32>
    %c6 = arith.constant 6 : index
    %c0_30 = arith.constant 0 : index
    %c0_31 = arith.constant 0 : index
    %59 = vector.load %arg3[%c6, %c0_30, %c0_31] : memref<9x8x4xf32, #tpu.memory_space<vmem>>, vector<1x8x4xf32>
    %60 = vector.shape_cast %59 : vector<1x8x4xf32> to vector<8x4xf32>
    %61 = vector.extract_strided_slice %58 {offsets = [0, 0], sizes = [4, 256], strides = [1, 1]} : vector<8x256xf32> to vector<4x256xf32>
    %cst_32 = arith.constant dense<0.000000e+00> : vector<8x256xf32>
    %62 = tpu.matmul %60, %61, %cst_32 {dimension_numbers = #tpu.dot_dimension_numbers<[1], [0], [0], [1], [0, 0, 1, 1], [], []>} : vector<8x4xf32>, vector<4x256xf32>, vector<8x256xf32> -> vector<8x256xf32>
    %63 = arith.addf %54, %62 : vector<8x256xf32>
    %64 = vector.extract_strided_slice %58 {offsets = [4, 0], sizes = [4, 256], strides = [1, 1]} : vector<8x256xf32> to vector<4x256xf32>
    %cst_33 = arith.constant dense<0.000000e+00> : vector<8x256xf32>
    %65 = tpu.matmul %60, %64, %cst_33 {dimension_numbers = #tpu.dot_dimension_numbers<[1], [0], [0], [1], [0, 0, 1, 1], [], []>} : vector<8x4xf32>, vector<4x256xf32>, vector<8x256xf32> -> vector<8x256xf32>
    %66 = arith.addf %57, %65 : vector<8x256xf32>
    %c223_i32 = arith.constant 223 : i32
    %67 = tpu.dynamic_rotate %6 by %c223_i32 dim 1 : vector<8x256xf32>, i32 -> vector<8x256xf32>
    %c7 = arith.constant 7 : index
    %c0_34 = arith.constant 0 : index
    %c0_35 = arith.constant 0 : index
    %68 = vector.load %arg3[%c7, %c0_34, %c0_35] : memref<9x8x4xf32, #tpu.memory_space<vmem>>, vector<1x8x4xf32>
    %69 = vector.shape_cast %68 : vector<1x8x4xf32> to vector<8x4xf32>
    %70 = vector.extract_strided_slice %67 {offsets = [0, 0], sizes = [4, 256], strides = [1, 1]} : vector<8x256xf32> to vector<4x256xf32>
    %cst_36 = arith.constant dense<0.000000e+00> : vector<8x256xf32>
    %71 = tpu.matmul %69, %70, %cst_36 {dimension_numbers = #tpu.dot_dimension_numbers<[1], [0], [0], [1], [0, 0, 1, 1], [], []>} : vector<8x4xf32>, vector<4x256xf32>, vector<8x256xf32> -> vector<8x256xf32>
    %72 = arith.addf %63, %71 : vector<8x256xf32>
    %73 = vector.extract_strided_slice %67 {offsets = [4, 0], sizes = [4, 256], strides = [1, 1]} : vector<8x256xf32> to vector<4x256xf32>
    %cst_37 = arith.constant dense<0.000000e+00> : vector<8x256xf32>
    %74 = tpu.matmul %69, %73, %cst_37 {dimension_numbers = #tpu.dot_dimension_numbers<[1], [0], [0], [1], [0, 0, 1, 1], [], []>} : vector<8x4xf32>, vector<4x256xf32>, vector<8x256xf32> -> vector<8x256xf32>
    %75 = arith.addf %66, %74 : vector<8x256xf32>
    %c222_i32 = arith.constant 222 : i32
    %76 = tpu.dynamic_rotate %6 by %c222_i32 dim 1 : vector<8x256xf32>, i32 -> vector<8x256xf32>
    %c8 = arith.constant 8 : index
    %c0_38 = arith.constant 0 : index
    %c0_39 = arith.constant 0 : index
    %77 = vector.load %arg3[%c8, %c0_38, %c0_39] : memref<9x8x4xf32, #tpu.memory_space<vmem>>, vector<1x8x4xf32>
    %78 = vector.shape_cast %77 : vector<1x8x4xf32> to vector<8x4xf32>
    %79 = vector.extract_strided_slice %76 {offsets = [0, 0], sizes = [4, 256], strides = [1, 1]} : vector<8x256xf32> to vector<4x256xf32>
    %cst_40 = arith.constant dense<0.000000e+00> : vector<8x256xf32>
    %80 = tpu.matmul %78, %79, %cst_40 {dimension_numbers = #tpu.dot_dimension_numbers<[1], [0], [0], [1], [0, 0, 1, 1], [], []>} : vector<8x4xf32>, vector<4x256xf32>, vector<8x256xf32> -> vector<8x256xf32>
    %81 = arith.addf %72, %80 : vector<8x256xf32>
    %82 = vector.extract_strided_slice %76 {offsets = [4, 0], sizes = [4, 256], strides = [1, 1]} : vector<8x256xf32> to vector<4x256xf32>
    %cst_41 = arith.constant dense<0.000000e+00> : vector<8x256xf32>
    %83 = tpu.matmul %78, %82, %cst_41 {dimension_numbers = #tpu.dot_dimension_numbers<[1], [0], [0], [1], [0, 0, 1, 1], [], []>} : vector<8x4xf32>, vector<4x256xf32>, vector<8x256xf32> -> vector<8x256xf32>
    %84 = arith.addf %75, %83 : vector<8x256xf32>
    %85 = vector.broadcast %5 : vector<8x1xf32> to vector<8x256xf32>
    %86 = arith.addf %81, %85 : vector<8x256xf32>
    %c0_42 = arith.constant 0 : index
    %c0_43 = arith.constant 0 : index
    %c0_44 = arith.constant 0 : index
    %87 = vector.load %arg5[%c0_42, %c0_43, %c0_44] : memref<2x8x256xf32, #tpu.memory_space<vmem>>, vector<1x8x256xf32>
    %88 = vector.shape_cast %87 : vector<1x8x256xf32> to vector<8x256xf32>
    %89 = vector.shape_cast %86 : vector<8x256xf32> to vector<1x8x256xf32>
    tpu.vector_store %arg5[%c0_42, %c0_43, %c0_44], %89 {strides = array<i32>} : memref<2x8x256xf32, #tpu.memory_space<vmem>>, vector<1x8x256xf32>,
    %90 = vector.broadcast %5 : vector<8x1xf32> to vector<8x256xf32>
    %91 = arith.addf %84, %90 : vector<8x256xf32>
    %c1_45 = arith.constant 1 : index
    %c0_46 = arith.constant 0 : index
    %c0_47 = arith.constant 0 : index
    %92 = vector.load %arg5[%c1_45, %c0_46, %c0_47] : memref<2x8x256xf32, #tpu.memory_space<vmem>>, vector<1x8x256xf32>
    %93 = vector.shape_cast %92 : vector<1x8x256xf32> to vector<8x256xf32>
    %94 = vector.shape_cast %91 : vector<8x256xf32> to vector<1x8x256xf32>
    tpu.vector_store %arg5[%c1_45, %c0_46, %c0_47], %94 {strides = array<i32>} : memref<2x8x256xf32, #tpu.memory_space<vmem>>, vector<1x8x256xf32>,
    return
  }
  func.func @transform_0(%arg0: i32) -> i32 {
    %c0_i32 = arith.constant 0 : i32
    %c0_i32_0 = arith.constant 0 : i32
    return %c0_i32 : i32
  }
  func.func @transform_1(%arg0: i32) -> (i32, i32) {
    %c0_i32 = arith.constant 0 : i32
    %c0_i32_0 = arith.constant 0 : i32
    %c0_i32_1 = arith.constant 0 : i32
    return %c0_i32, %c0_i32_0 : i32, i32
  }
  func.func @transform_2(%arg0: i32) -> (i32, i32, i32) {
    %c0_i32 = arith.constant 0 : i32
    %c0_i32_0 = arith.constant 0 : i32
    %c0_i32_1 = arith.constant 0 : i32
    %c0_i32_2 = arith.constant 0 : i32
    return %c0_i32, %c0_i32_0, %c0_i32_1 : i32, i32, i32
  }
  func.func @transform_3(%arg0: i32) -> (i32, i32) {
    %c0_i32 = arith.constant 0 : i32
    %c0_i32_0 = arith.constant 0 : i32
    return %arg0, %c0_i32 : i32, i32
  }
  func.func @transform_4(%arg0: i32) -> (i32, i32, i32) {
    %c0_i32 = arith.constant 0 : i32
    %c0_i32_0 = arith.constant 0 : i32
    %c0_i32_1 = arith.constant 0 : i32
    return %arg0, %c0_i32, %c0_i32_0 : i32, i32, i32
  }
}

</mosaic_0001>

<bundles_post_ra>
// kernel: tpu_custom_call.1
= control target key start
LH: loop header
LB: loop body
LE: loop exit
PB: predicated region body
PF: predicated region fallthrough
CT: control target
= control target key end

     0   :  { %s1310_s0 = inlined_call_operand.<no memory space> [shape: f32[1], index: 0, kind: input, shape index: {}]   ;;  %s1311_s1 = inlined_call_operand.vmem [shape: f32[8,2], index: 1, kind: input, shape index: {}]   ;;  %s1312_s2 = inlined_call_operand.vmem [shape: f32[9,8,4], index: 2, kind: input, shape index: {}]   ;;  %s1313_s3 = inlined_call_operand.vmem [shape: f32[8,256], index: 3, kind: input, shape index: {}]   ;;  %s1314_s4 = inlined_call_operand.hbm [shape: f32[2,8,256], index: 4, kind: output, shape index: {}]  }
   0x1   :  { %v28_v0 = vld [vmem:[%s1313_s3] sm:$0xff] }
   0x2   :  { %10 = vsyncpa [#allocation4], 0  ;;  %s1142_s17 = smov 126   ;;  %s1143_s18 = smov 127   ;;  %v29_v1 = vld [vmem:[%s1313_s3 + $0x8] sm:$0xff]  ;;  %vm46_vm0 = vcmask 1043456   ;;  %v21_v4 = vstv %s1310_s0  ;;  %v35_v9 = vlaneseq }
   0x3   :  { %234 = vrot.lane.b32.xlu1 %v28_v0, %s1142_s17  ;;  %31 = vrot.lane.b32.xlu0 %v28_v0, %s1143_s18  ;;  %s1144_s19 = smov 112   ;;  %vm42_vm1 = vcmask 31744   ;;  %v30_v2 = vld [vmem:[%s1312_s2] sm:$0xff]  ;;  %s1145_s24 = smov 111   ;;  %v188_v6 = vrot.slane %v28_v0, 4  ;;  %v189_v7 = vrot.slane %v29_v1, 4 }
   0x4   :  { %342 = vrot.lane.b32.xlu2 %v28_v0, %s1144_s19  ;;  %1027 = vmatpush.msk.msra.mxu2 %vm46_vm0, %v28_v0  ;;  %s1146_s3 = smov 110   ;;  %s1147_s25 = smov 96   ;;  %v1197_v3 = vld [vmem:[%s1311_s1] sm:$0xff]  ;;  %v1208_v12 = vand.u32 127, %v35_v9  ;;  %v1022_v18 = vld [vmem:[%s1312_s2 + $0x8] sm:$0xff]  ;;  %v1039_v29 = vld [vmem:[%s1312_s2 + $0x10] sm:$0xff] }
   0x5   :  { %1029 = vmatpush.msk.msra.mxu3 %vm46_vm0, %v29_v1  ;;  %1028 = vmatmul.msk.f32.vlgmr.msra.gmra.mxu2 %vm42_vm1, %v30_v2  ;;  %s1148_s26 = smov 95   ;;  %s1149_s27 = smov 94   ;;  %v22_v5 = vmul.f32 %v21_v4, %v1197_v3  ;;  %v1048_v37 = vld [vmem:[%s1312_s2 + $0x18] sm:$0xff]  ;;  %v1057_v47 = vld [vmem:[%s1312_s2 + $0x20] sm:$0xff]  ;;  %v1066_v54 = vld [vmem:[%s1312_s2 + $0x28] sm:$0xff] }
   0x6   :  { %1030 = vmatmul.msk.f32.vlgmr.msra.gmra.mxu3 %vm42_vm1, %v30_v2  ;;  %1035 = vmatpush.msk.msrb.mxu2 %vm46_vm0, %v188_v6  ;;  %vm346_vm2 = vcmp.lt.s32.totalorder %v1208_v12, 112  ;;  %vm238_vm3 = vcmp.lt.s32.totalorder %v1208_v12, 126  ;;  %vm37_vm4 = vcmp.lt.s32.totalorder %v1208_v12, 127  ;;  %vm454_vm5 = vcmp.lt.s32.totalorder %v1208_v12, 111  ;;  %v1075_v62 = vld [vmem:[%s1312_s2 + $0x30] sm:$0xff]  ;;  %v1093_v4 = vld [vmem:[%s1312_s2 + $0x40] sm:$0xff] }
   0x7   :  { %1037 = vmatpush.msk.msrb.mxu3 %vm46_vm0, %v189_v7  ;;  %vm562_vm6 = vcmp.lt.s32.totalorder %v1208_v12, 110  ;;  %vm670_vm7 = vcmp.lt.s32.totalorder %v1208_v12, 96  ;;  %vm778_vm8 = vcmp.lt.s32.totalorder %v1208_v12, 95  ;;  %vm886_vm9 = vcmp.lt.s32.totalorder %v1208_v12, 94  ;;  %s1010_s23 = sshll.u32 %s1314_s4, 4  ;;  %s1011_s23 = int_to_ptr.hbm [resolvable:$true] %s1010_s23 }
   0xb   :  { %236 = vrot.lane.b32.xlu1 %v29_v1, %s1142_s17  ;;  %33 = vrot.lane.b32.xlu0 %v29_v1, %s1143_s18 }
   0xc   :  { %344 = vrot.lane.b32.xlu2 %v29_v1, %s1144_s19 }
   0xd   :  { %1036 = vmatmul.msk.f32.vlgmr.msrb.gmra.mxu2 %vm42_vm1, %v30_v2 }
   0xe   :  { %1038 = vmatmul.msk.f32.vlgmr.msrb.gmra.mxu3 %vm42_vm1, %v30_v2  ;;  %v1150_v2 = vmov 0  }
   0xf   :  { %1114 = vset.pattern.permute.xlu2 %v1150_v2  ;;  %1115 = vset.pattern.permute.xlu0 %v1150_v2 }
  0x13   :  { %452 = vrot.lane.b32.xlu1 %v29_v1, %s1145_s24  ;;  %450 = vrot.lane.b32.xlu0 %v28_v0, %s1145_s24  ;;  %s1152_s24 = smov 256  }
  0x14   :  { %558 = vrot.lane.b32.xlu2 %v28_v0, %s1146_s3 }
  0x1b   :  { %560 = vrot.lane.b32.xlu0 %v29_v1, %s1146_s3  ;;  %666 = vrot.lane.b32.xlu1 %v28_v0, %s1147_s25  ;;  %s1153_s3 = smov 16  }
  0x1c   :  { %668 = vrot.lane.b32.xlu2 %v29_v1, %s1147_s25 }
  0x23   :  { %776 = vrot.lane.b32.xlu1 %v29_v1, %s1148_s26  ;;  %774 = vrot.lane.b32.xlu0 %v28_v0, %s1148_s26 }
  0x24   :  { %882 = vrot.lane.b32.xlu2 %v28_v0, %s1149_s27 }
  0x2b   :  { %884 = vrot.lane.b32.xlu0 %v29_v1, %s1149_s27  ;;  %24 = vrot.lane.b32.xlu1 %v22_v5, %s1143_s18 }
  0x5e   :  { %v343_v8 = vpop.permute.xlu2 %342 }
  0x66   :  { %v345_v13 = vpop.permute.xlu2 %344 }
  0x67   :  { %v347_v16 = vsel %vm346_vm2, %v343_v8, %v345_v13  ;;  %v348_v17 = vsel %vm346_vm2, %v345_v13, %v343_v8 }
  0x68   :  { %v402_v27 = vrot.slane %v347_v16, 4  ;;  %v403_v28 = vrot.slane %v348_v17, 4 }
  0x6e   :  { %v559_v30 = vpop.permute.xlu2 %558 }
  0x75   :  { %v235_v10 = vpop.permute.xlu1 %234  ;;  %v32_v11 = vpop.permute.xlu0 %31 }
  0x76   :  { %v669_v38 = vpop.permute.xlu2 %668 }
  0x7d   :  { %v237_v14 = vpop.permute.xlu1 %236  ;;  %v34_v15 = vpop.permute.xlu0 %33 }
  0x7e   :  { %v239_v19 = vsel %vm238_vm3, %v235_v10, %v237_v14  ;;  %v240_v20 = vsel %vm238_vm3, %v237_v14, %v235_v10  ;;  %v38_v21 = vsel %vm37_vm4, %v32_v11, %v34_v15  ;;  %v39_v22 = vsel %vm37_vm4, %v34_v15, %v32_v11  ;;  %v883_v57 = vpop.permute.xlu2 %882 }
  0x7f   :  { %v294_v23 = vrot.slane %v239_v19, 4  ;;  %v295_v24 = vrot.slane %v240_v20, 4  ;;  %1023 = vmatpush.msk.msra.mxu0 %vm46_vm0, %v38_v21  ;;  %v142_v25 = vrot.slane %v38_v21, 4  ;;  %1025 = vmatpush.msk.msra.mxu1 %vm46_vm0, %v39_v22  ;;  %v143_v26 = vrot.slane %v39_v22, 4 }
  0x80   :  { %1024 = vmatmul.msk.f32.vlgmr.msra.gmra.mxu0 %vm42_vm1, %v1022_v18  ;;  %1026 = vmatmul.msk.f32.vlgmr.msra.gmra.mxu1 %vm42_vm1, %v1022_v18 }
  0x81   :  { %1031 = vmatpush.msk.msrb.mxu0 %vm46_vm0, %v142_v25  ;;  %1033 = vmatpush.msk.msrb.mxu1 %vm46_vm0, %v143_v26 }
  0x82   :  { %1044 = vmatpush.msk.msra.mxu2 %vm46_vm0, %v294_v23  ;;  %1046 = vmatpush.msk.msra.mxu3 %vm46_vm0, %v295_v24 }
  0x83   :  { %1040 = vmatpush.msk.msra.mxu0 %vm46_vm0, %v239_v19  ;;  %1042 = vmatpush.msk.msra.mxu1 %vm46_vm0, %v240_v20 }
  0x84   :  { %1045 = vmatmul.msk.f32.vlgmr.msra.gmra.mxu2 %vm42_vm1, %v1039_v29  ;;  %1047 = vmatmul.msk.f32.vlgmr.msra.gmra.mxu3 %vm42_vm1, %v1039_v29 }
  0x85   :  { %1053 = vmatpush.msk.msrb.mxu2 %vm46_vm0, %v402_v27  ;;  %1055 = vmatpush.msk.msrb.mxu3 %vm46_vm0, %v403_v28  ;;  %v453_v31 = vpop.permute.xlu1 %452  ;;  %v451_v32 = vpop.permute.xlu0 %450 }
  0x86   :  { %v455_v33 = vsel %vm454_vm5, %v451_v32, %v453_v31  ;;  %v456_v34 = vsel %vm454_vm5, %v453_v31, %v451_v32 }
  0x87   :  { %v510_v35 = vrot.slane %v455_v33, 4  ;;  %v511_v36 = vrot.slane %v456_v34, 4 }
  0x88   :  { %1032 = vmatmul.msk.f32.vlgmr.msrb.gmra.mxu0 %vm42_vm1, %v1022_v18  ;;  %1034 = vmatmul.msk.f32.vlgmr.msrb.gmra.mxu1 %vm42_vm1, %v1022_v18  ;;  %v119_v5 = vpop.f32.mrf.mxu2 }
  0x89   :  { %1049 = vmatpush.msk.msrb.mxu0 %vm46_vm0, %v347_v16  ;;  %1051 = vmatpush.msk.msrb.mxu1 %vm46_vm0, %v348_v17  ;;  %v139_v6 = vpop.f32.mrf.mxu3 }
  0x8a   :  { %1062 = vmatpush.msk.msra.mxu2 %vm46_vm0, %v510_v35  ;;  %1064 = vmatpush.msk.msra.mxu3 %vm46_vm0, %v511_v36 }
  0x8c   :  { %1054 = vmatmul.msk.f32.vlgmr.msrb.gmra.mxu2 %vm42_vm1, %v1048_v37  ;;  %1056 = vmatmul.msk.f32.vlgmr.msrb.gmra.mxu3 %vm42_vm1, %v1048_v37 }
  0x8d   :  { %v561_v39 = vpop.permute.xlu0 %560  ;;  %v667_v40 = vpop.permute.xlu1 %666 }
  0x8e   :  { %v563_v41 = vsel %vm562_vm6, %v559_v30, %v561_v39  ;;  %v564_v42 = vsel %vm562_vm6, %v561_v39, %v559_v30  ;;  %v671_v43 = vsel %vm670_vm7, %v667_v40, %v669_v38  ;;  %v672_v44 = vsel %vm670_vm7, %v669_v38, %v667_v40 }
  0x8f   :  { %v618_v45 = vrot.slane %v563_v41, 4  ;;  %v619_v46 = vrot.slane %v564_v42, 4  ;;  %v726_v48 = vrot.slane %v671_v43, 4  ;;  %v727_v49 = vrot.slane %v672_v44, 4 }
  0x90   :  { %1041 = vmatmul.msk.f32.vlgmr.msra.gmra.mxu0 %vm42_vm1, %v1039_v29  ;;  %1043 = vmatmul.msk.f32.vlgmr.msra.gmra.mxu1 %vm42_vm1, %v1039_v29  ;;  %v211_v7 = vpop.f32.mrf.mxu2 }
  0x91   :  { %1058 = vmatpush.msk.msra.mxu0 %vm46_vm0, %v455_v33  ;;  %1060 = vmatpush.msk.msra.mxu1 %vm46_vm0, %v456_v34  ;;  %v231_v8 = vpop.f32.mrf.mxu3 }
  0x92   :  { %1071 = vmatpush.msk.msrb.mxu2 %vm46_vm0, %v618_v45  ;;  %1073 = vmatpush.msk.msrb.mxu3 %vm46_vm0, %v619_v46 }
  0x94   :  { %1063 = vmatmul.msk.f32.vlgmr.msra.gmra.mxu2 %vm42_vm1, %v1057_v47  ;;  %1065 = vmatmul.msk.f32.vlgmr.msra.gmra.mxu3 %vm42_vm1, %v1057_v47 }
  0x95   :  { %1080 = vmatpush.msk.msra.mxu2 %vm46_vm0, %v726_v48  ;;  %1082 = vmatpush.msk.msra.mxu3 %vm46_vm0, %v727_v49  ;;  %v777_v50 = vpop.permute.xlu1 %776  ;;  %v775_v51 = vpop.permute.xlu0 %774 }
  0x96   :  { %v779_v52 = vsel %vm778_vm8, %v775_v51, %v777_v50  ;;  %v780_v53 = vsel %vm778_vm8, %v777_v50, %v775_v51 }
  0x97   :  { %v834_v55 = vrot.slane %v779_v52, 4  ;;  %v835_v56 = vrot.slane %v780_v53, 4 }
  0x98   :  { %1050 = vmatmul.msk.f32.vlgmr.msrb.gmra.mxu0 %vm42_vm1, %v1048_v37  ;;  %1052 = vmatmul.msk.f32.vlgmr.msrb.gmra.mxu1 %vm42_vm1, %v1048_v37 }
  0x99   :  { %1067 = vmatpush.msk.msrb.mxu0 %vm46_vm0, %v563_v41  ;;  %1069 = vmatpush.msk.msrb.mxu1 %vm46_vm0, %v564_v42 }
  0x9c   :  { %1072 = vmatmul.msk.f32.vlgmr.msrb.gmra.mxu2 %vm42_vm1, %v1066_v54  ;;  %1074 = vmatmul.msk.f32.vlgmr.msrb.gmra.mxu3 %vm42_vm1, %v1066_v54 }
  0x9d   :  { %1089 = vmatpush.msk.msrb.mxu2 %vm46_vm0, %v834_v55  ;;  %1091 = vmatpush.msk.msrb.mxu3 %vm46_vm0, %v835_v56  ;;  %v885_v58 = vpop.permute.xlu0 %884  ;;  %v25_v61 = vpop.permute.xlu1 %24 }
  0x9e   :  { %v887_v59 = vsel %vm886_vm9, %v883_v57, %v885_v58  ;;  %v888_v60 = vsel %vm886_vm9, %v885_v58, %v883_v57  ;;  %v27_v1 = vadd.f32 %v25_v61, %v1197_v3  ;;  %v1084_v3 = vld [vmem:[%s1312_s2 + $0x38] sm:$0xff]  ;;  %s1151_s2 = smov [#allocation3]  }
  0x9f   :  { %v942_v63 = vrot.slane %v887_v59, 4  ;;  %v943_v0 = vrot.slane %v888_v60, 4  ;;  %s1008_s20 = sshll.u32 %s1151_s2, 4  ;;  %s1009_s20 = int_to_ptr.vmem [resolvable:$true] %s1008_s20 }
  0xa0   :  { %1059 = vmatmul.msk.f32.vlgmr.msra.gmra.mxu0 %vm42_vm1, %v1057_v47  ;;  %1061 = vmatmul.msk.f32.vlgmr.msra.gmra.mxu1 %vm42_vm1, %v1057_v47 }
  0xa1   :  { %1076 = vmatpush.msk.msra.mxu0 %vm46_vm0, %v671_v43  ;;  %1078 = vmatpush.msk.msra.mxu1 %vm46_vm0, %v672_v44 }
  0xa2   :  { %992 = vperm.xlu2 %1114, %v27_v1  }
  0xa4   :  { %1081 = vmatmul.msk.f32.vlgmr.msra.gmra.mxu2 %vm42_vm1, %v1075_v62  ;;  %1083 = vmatmul.msk.f32.vlgmr.msra.gmra.mxu3 %vm42_vm1, %v1075_v62 }
  0xa5   :  { %1098 = vmatpush.msk.msra.mxu2 %vm46_vm0, %v942_v63  ;;  %1100 = vmatpush.msk.msra.mxu3 %vm46_vm0, %v943_v0 }
  0xa8   :  { %1068 = vmatmul.msk.f32.vlgmr.msrb.gmra.mxu0 %vm42_vm1, %v1066_v54  ;;  %1070 = vmatmul.msk.f32.vlgmr.msrb.gmra.mxu1 %vm42_vm1, %v1066_v54 }
  0xa9   :  { %1085 = vmatpush.msk.msrb.mxu0 %vm46_vm0, %v779_v52  ;;  %1087 = vmatpush.msk.msrb.mxu1 %vm46_vm0, %v780_v53 }
  0xac   :  { %1090 = vmatmul.msk.f32.vlgmr.msrb.gmra.mxu2 %vm42_vm1, %v1084_v3  ;;  %1092 = vmatmul.msk.f32.vlgmr.msrb.gmra.mxu3 %vm42_vm1, %v1084_v3 }
  0xb0   :  { %1077 = vmatmul.msk.f32.vlgmr.msra.gmra.mxu0 %vm42_vm1, %v1075_v62  ;;  %1079 = vmatmul.msk.f32.vlgmr.msra.gmra.mxu1 %vm42_vm1, %v1075_v62 }
  0xb1   :  { %1094 = vmatpush.msk.msra.mxu0 %vm46_vm0, %v887_v59  ;;  %1096 = vmatpush.msk.msra.mxu1 %vm46_vm0, %v888_v60 }
  0xb4   :  { %1099 = vmatmul.msk.f32.vlgmr.msra.gmra.mxu2 %vm42_vm1, %v1093_v4  ;;  %1101 = vmatmul.msk.f32.vlgmr.msra.gmra.mxu3 %vm42_vm1, %v1093_v4 }
  0xb8   :  { %1086 = vmatmul.msk.f32.vlgmr.msrb.gmra.mxu0 %vm42_vm1, %v1084_v3  ;;  %1088 = vmatmul.msk.f32.vlgmr.msrb.gmra.mxu1 %vm42_vm1, %v1084_v3 }
  0xc0   :  { %1095 = vmatmul.msk.f32.vlgmr.msra.gmra.mxu0 %vm42_vm1, %v1093_v4  ;;  %1097 = vmatmul.msk.f32.vlgmr.msra.gmra.mxu1 %vm42_vm1, %v1093_v4 }
  0xfc   :  { %v993_v59 = vpop.permute.xlu2 %992 }
  0xfd   :  { %v70_v9 = vpop.f32.mrf.mxu0  ;;  %v90_v10 = vpop.f32.mrf.mxu1 }
  0xfe   :  { %v120_v41 = vadd.f32 %v119_v5, %v70_v9  ;;  %v140_v42 = vadd.f32 %v139_v6, %v90_v10 }
 0x105   :  { %v165_v11 = vpop.f32.mrf.mxu0  ;;  %v185_v12 = vpop.f32.mrf.mxu1 }
 0x106   :  { %v212_v31 = vadd.f32 %v211_v7, %v165_v11  ;;  %v232_v32 = vadd.f32 %v231_v8, %v185_v12 }
 0x107   :  { %v317_v13 = vpop.f32.mrf.mxu2  ;;  %v337_v14 = vpop.f32.mrf.mxu3 }
 0x108   :  { %v340_v33 = vadd.f32 %v317_v13, %v212_v31  ;;  %v341_v34 = vadd.f32 %v337_v14, %v232_v32 }
 0x10d   :  { %v269_v15 = vpop.f32.mrf.mxu0  ;;  %v289_v16 = vpop.f32.mrf.mxu1 }
 0x10e   :  { %v292_v45 = vadd.f32 %v269_v15, %v120_v41  ;;  %v293_v46 = vadd.f32 %v289_v16, %v140_v42 }
 0x10f   :  { %v425_v17 = vpop.f32.mrf.mxu2  ;;  %v445_v18 = vpop.f32.mrf.mxu3 }
 0x110   :  { %v448_v37 = vadd.f32 %v425_v17, %v340_v33  ;;  %v449_v38 = vadd.f32 %v445_v18, %v341_v34 }
 0x115   :  { %v377_v19 = vpop.f32.mrf.mxu0  ;;  %v397_v20 = vpop.f32.mrf.mxu1 }
 0x116   :  { %v400_v49 = vadd.f32 %v377_v19, %v292_v45  ;;  %v401_v50 = vadd.f32 %v397_v20, %v293_v46 }
 0x117   :  { %v533_v21 = vpop.f32.mrf.mxu2  ;;  %v553_v22 = vpop.f32.mrf.mxu3 }
 0x118   :  { %v556_v43 = vadd.f32 %v533_v21, %v448_v37  ;;  %v557_v44 = vadd.f32 %v553_v22, %v449_v38 }
 0x11d   :  { %v485_v23 = vpop.f32.mrf.mxu0  ;;  %v505_v24 = vpop.f32.mrf.mxu1 }
 0x11e   :  { %v508_v55 = vadd.f32 %v485_v23, %v400_v49  ;;  %v509_v56 = vadd.f32 %v505_v24, %v401_v50 }
 0x11f   :  { %v641_v25 = vpop.f32.mrf.mxu2  ;;  %v661_v26 = vpop.f32.mrf.mxu3 }
 0x120   :  { %v664_v47 = vadd.f32 %v641_v25, %v556_v43  ;;  %v665_v48 = vadd.f32 %v661_v26, %v557_v44 }
 0x125   :  { %v593_v27 = vpop.f32.mrf.mxu0  ;;  %v613_v28 = vpop.f32.mrf.mxu1 }
 0x126   :  { %v616_v62 = vadd.f32 %v593_v27, %v508_v55  ;;  %v617_v63 = vadd.f32 %v613_v28, %v509_v56 }
 0x127   :  { %v749_v29 = vpop.f32.mrf.mxu2  ;;  %v769_v30 = vpop.f32.mrf.mxu3 }
 0x128   :  { %v772_v51 = vadd.f32 %v749_v29, %v664_v47  ;;  %v773_v52 = vadd.f32 %v769_v30, %v665_v48 }
 0x12d   :  { %v701_v35 = vpop.f32.mrf.mxu0  ;;  %v721_v36 = vpop.f32.mrf.mxu1 }
 0x12e   :  { %v724_v2 = vadd.f32 %v701_v35, %v616_v62  ;;  %v725_v3 = vadd.f32 %v721_v36, %v617_v63 }
 0x12f   :  { %v857_v39 = vpop.f32.mrf.mxu2  ;;  %v877_v40 = vpop.f32.mrf.mxu3 }
 0x130   :  { %v880_v57 = vadd.f32 %v857_v39, %v772_v51  ;;  %v881_v58 = vadd.f32 %v877_v40, %v773_v52 }
 0x135   :  { %v809_v53 = vpop.f32.mrf.mxu0  ;;  %v829_v54 = vpop.f32.mrf.mxu1 }
 0x136   :  { %v832_v6 = vadd.f32 %v809_v53, %v724_v2  ;;  %v833_v7 = vadd.f32 %v829_v54, %v725_v3 }
 0x137   :  { %v965_v60 = vpop.f32.mrf.mxu2  ;;  %v985_v61 = vpop.f32.mrf.mxu3 }
 0x138   :  { %v988_v0 = vadd.f32 %v965_v60, %v880_v57  ;;  %v989_v1 = vadd.f32 %v985_v61, %v881_v58 }
 0x13a   :  { %v999_v4 = vadd.f32 %v993_v59, %v988_v0  ;;  %v1000_v5 = vadd.f32 %v993_v59, %v989_v1 }
 0x13c   :  { %1002 = vst [vmem:[#allocation3 + $0x10] sm:$0xff] %v999_v4 }
 0x13d   :  { %1003 = vst [vmem:[#allocation3 + $0x18] sm:$0xff] %v1000_v5  ;;  %v917_v8 = vpop.f32.mrf.mxu0  ;;  %v937_v9 = vpop.f32.mrf.mxu1 }
 0x13e   :  { %v940_v10 = vadd.f32 %v917_v8, %v832_v6  ;;  %v941_v11 = vadd.f32 %v937_v9, %v833_v7 }
 0x140   :  { %v995_v12 = vadd.f32 %v993_v59, %v940_v10  ;;  %v996_v13 = vadd.f32 %v993_v59, %v941_v11 }
 0x142   :  { %997 = vst [vmem:[#allocation3] sm:$0xff] %v995_v12 }
 0x143   :  { %998 = vst [vmem:[#allocation3 + $0x8] sm:$0xff] %v996_v13 }
 0x144   :  { %1016 = dma.vmem_to_hbm [thread:$0]  %s1009_s20, 512, %s1011_s23, [#allocation4], %s1152_s24, %s1152_s24, %s1153_s3  }
 0x145   :  { %1140 = dma.done.wait [#allocation4], 512  }
 0x146   :  { %1141 = vsyncadd [#allocation4], 4294966784 }
 0x147   :  { %1021 = vsyncpa [#allocation4], 1 }

</bundles_post_ra>
